<compile_context>
chip_gen: v7x
topology: tpu7x:2x2x1
jax: 0.10.0
libtpu: 0.0.40
codegen_flags: <defaults>
</compile_context>

<pallas_src>
import functools

import jax
import jax.numpy as jnp
from jax.experimental import pallas as pl
from jax.experimental.pallas import tpu as pltpu

_LANE = 128
_SUB = 8


def _tpu_config():
    """Returns (n_cores, max_tile_rows) tuned per TPU generation."""
    try:
        kind = jax.devices()[0].device_kind.lower()
    except Exception:
        kind = ""
    if "v7" in kind:
        # 2 TensorCores; 4 MiB blocks x 2 inputs x 2 buffers = 16 MiB < 32 MiB.
        return 2, 8192
    if "v6" in kind:
        return 1, 8192
    # v5e (16 MiB scoped VMEM default) and unknown chips: stay conservative.
    return 1, 4096


def _bce_iou_partial_kernel(o_ref, t_ref, inter_ref, total_ref, pbce_ref,
                            *, tile_rows, rows, steps, nrb, need_mask):
    j = pl.program_id(1)

    @pl.when(j == 0)
    def _():
        inter_ref[...] = jnp.zeros_like(inter_ref)
        total_ref[...] = jnp.zeros_like(total_ref)
        pbce_ref[...] = jnp.zeros_like(pbce_ref)

    # Keep narrow dtypes on the wire; accumulate in f32.
    o = o_ref[...].astype(jnp.float32)
    t = t_ref[...].astype(jnp.float32)

    def accumulate(o, t):
        def fold(x):
            # (tile_rows, 128) -> (1, 8, 128): tile-aligned reshape + VPU adds.
            return jnp.sum(x.reshape(tile_rows // _SUB, _SUB, _LANE), axis=0)[None]

        inter_ref[...] += fold(o * t)
        total_ref[...] += fold(o + t)
        # Positive-sign BCE partial (negated once in the wrapper); the
        # t*(log_o - log_1mo) + log_1mo form drops the (1 - t) multiply.
        log_o = jnp.maximum(jnp.log(o), -100.0)        # PyTorch log clamp
        log_1mo = jnp.maximum(jnp.log(1.0 - o), -100.0)
        pbce_ref[...] += fold(t * (log_o - log_1mo) + log_1mo)

    if need_mask:
        rb = pl.program_id(0) * steps + j   # global row-block index

        # Fast unmasked path: every full interior block.
        @pl.when(rb < nrb - 1)
        def _():
            accumulate(o, t)

        # Ragged last block + clamped phantom blocks: zero invalid rows BEFORE
        # the logs so they contribute exactly 0 to all three sums.
        @pl.when(rb >= nrb - 1)
        def _():
            row0 = rb * tile_rows
            row_idx = row0 + jax.lax.broadcasted_iota(
                jnp.int32, (tile_rows, _LANE), 0)
            valid = row_idx < rows
            accumulate(jnp.where(valid, o, 0.0), jnp.where(valid, t, 0.0))
    else:
        accumulate(o, t)


def _partial_sums(o2, t2, rows, n_cores, max_tile_rows):
    """Per-core (8,128) partial sums of o*t, o+t, and +BCE over a (rows,128) view."""
    # Block rows: multiple of 16 (sublane-safe for f32/bf16), capped per-chip.
    tile_rows = min(max_tile_rows, ((rows + 15) // 16) * 16)
    nrb = pl.cdiv(rows, tile_rows)        # number of valid row-blocks
    steps = pl.cdiv(nrb, n_cores)         # row-blocks per core
    need_mask = (n_cores * steps * tile_rows) != rows

    def in_map(c, j):
        # Clamp phantom trailing blocks back in-bounds; the in-kernel row mask
        # zeroes their contribution.
        return (jnp.minimum(c * steps + j, nrb - 1), 0)

    kernel = functools.partial(
        _bce_iou_partial_kernel, tile_rows=tile_rows, rows=rows, steps=steps,
        nrb=nrb, need_mask=need_mask)

    part_shape = jax.ShapeDtypeStruct((n_cores, _SUB, _LANE), jnp.float32)
    out_spec = pl.BlockSpec((1, _SUB, _LANE), lambda c, j: (c, 0, 0))

    # Real 2-TensorCore split on v7x; plain sequential axis elsewhere.
    lead = pltpu.CORE_PARALLEL if n_cores > 1 else pltpu.ARBITRARY
    dims = (lead, pltpu.ARBITRARY)

    return pl.pallas_call(
        kernel,
        out_shape=(part_shape, part_shape, part_shape),
        grid_spec=pltpu.PrefetchScalarGridSpec(
            num_scalar_prefetch=0,
            grid=(n_cores, steps),
            in_specs=[
                pl.BlockSpec((tile_rows, _LANE), in_map),
                pl.BlockSpec((tile_rows, _LANE), in_map),
            ],
            out_specs=[out_spec, out_spec, out_spec],
        ),
        compiler_params=pltpu.CompilerParams(dimension_semantics=dims),
    )(o2, t2)


def bce_iou_loss(outputs, targets, beta=0.6, alpha=0.25, gamma=4, smooth=0.0):
    """Pallas equivalent of BCEIoULoss.forward. Returns a scalar f32."""
    o = outputs.reshape(-1)
    t = targets.reshape(-1)
    n = o.shape[0]
    n_cores, max_tile_rows = _tpu_config()

    n_aligned = (n // _LANE) * _LANE
    rows = n_aligned // _LANE

    intersection = jnp.float32(0.0)
    total = jnp.float32(0.0)
    pbce_sum = jnp.float32(0.0)   # positive-sign BCE sum

    if rows > 0:
        # 128-aligned prefix streams through the kernel with no pad / no copy.
        o_main = o if n_aligned == n else o[:n_aligned]
        t_main = t if n_aligned == n else t[:n_aligned]
        inter_p, total_p, pbce_p = _partial_sums(
            o_main.reshape(rows, _LANE), t_main.reshape(rows, _LANE),
            rows, n_cores, max_tile_rows)
        intersection = intersection + jnp.sum(inter_p)
        total = total + jnp.sum(total_p)
        pbce_sum = pbce_sum + jnp.sum(pbce_p)

    if n_aligned < n:
        # <=127-element lane tail handled in plain JAX (avoids jnp.pad copy).
        ot = o[n_aligned:].astype(jnp.float32)
        tt = t[n_aligned:].astype(jnp.float32)
        intersection = intersection + jnp.sum(ot * tt)
        total = total + jnp.sum(ot + tt)
        log_o = jnp.maximum(jnp.log(ot), -100.0)
        log_1mo = jnp.maximum(jnp.log(1.0 - ot), -100.0)
        pbce_sum = pbce_sum + jnp.sum(tt * (log_o - log_1mo) + log_1mo)

    # Scalar combine (tiny; plain JAX).
    union = total - intersection
    iou_loss = 1.0 - (intersection + smooth) / (union + smooth)
    bce_loss = -pbce_sum / jnp.float32(n)          # BCELoss mean reduction
    bce_exp = jnp.exp(-bce_loss)
    modified_bce = alpha * (1.0 - bce_exp) ** gamma * bce_loss
    return beta * modified_bce + (1.0 - beta) * iou_loss


def _reference(outputs, targets, beta=0.6, alpha=0.25, gamma=4, smooth=0.0):
    o = outputs.reshape(-1).astype(jnp.float32)
    t = targets.reshape(-1).astype(jnp.float32)
    inter = jnp.sum(o * t)
    total = jnp.sum(o + t)
    union = total - inter
    iou = 1.0 - (inter + smooth) / (union + smooth)
    bce = jnp.mean(-(t * jnp.maximum(jnp.log(o), -100.0)
                     + (1.0 - t) * jnp.maximum(jnp.log(1.0 - o), -100.0)))
    mod = alpha * (1.0 - jnp.exp(-bce)) ** gamma * bce
    return beta * mod + (1.0 - beta) * iou


if __name__ == "__main__":
    key = jax.random.PRNGKey(0)
    k1, k2 = jax.random.split(key)

    # NCHW-like shapes, as the module would receive from a sigmoid'd conv net.
    outputs = jax.nn.sigmoid(jax.random.normal(k1, (2, 4, 16, 16), jnp.float32))
    targets = (jax.random.uniform(k2, (2, 4, 16, 16)) > 0.5).astype(jnp.float32)

    loss = bce_iou_loss(outputs, targets)
    loss = jax.block_until_ready(loss)

    ref = _reference(outputs, targets)
    assert jnp.allclose(loss, ref, rtol=1e-5, atol=1e-5), (loss, ref)

    print("KERNEL_OK")
</pallas_src>

<mosaic_0001>
module attributes {stable_mosaic.version = 11 : i64} {
  func.func @_bce_iou_partial_kernel(%arg0: i32, %arg1: i32, %arg2: memref<16x128xf32, #tpu.memory_space<vmem>>, %arg3: memref<16x128xf32, #tpu.memory_space<vmem>>, %arg4: memref<1x8x128xf32, #tpu.memory_space<vmem>>, %arg5: memref<1x8x128xf32, #tpu.memory_space<vmem>>, %arg6: memref<1x8x128xf32, #tpu.memory_space<vmem>>) attributes {dimension_semantics = [#tpu.dimension_semantics<arbitrary>, #tpu.dimension_semantics<arbitrary>], iteration_bounds = array<i64: 1, 1>, scalar_prefetch = 0 : i64, scratch_operands = 0 : i64, tpu.core_type = #tpu.core_type<tc>, window_params = [{transform_indices = @transform_0, window_bounds = array<i64: 16, 128>}, {transform_indices = @transform_1, window_bounds = array<i64: 16, 128>}, {transform_indices = @transform_2, window_bounds = array<i64: 1, 8, 128>}, {transform_indices = @transform_3, window_bounds = array<i64: 1, 8, 128>}, {transform_indices = @transform_4, window_bounds = array<i64: 1, 8, 128>}]} {
    %c0_i32 = arith.constant 0 : i32
    %0 = arith.cmpi eq, %arg1, %c0_i32 : i32
    %1 = arith.extui %0 : i1 to i32
    %c0_i32_0 = arith.constant 0 : i32
    %2 = arith.cmpi ne, %1, %c0_i32_0 : i32
    scf.if %2 {
      %cst_27 = arith.constant 0.000000e+00 : f32
      %36 = vector.broadcast %cst_27 : f32 to vector<1x8x128xf32>
      %c0_28 = arith.constant 0 : index
      %c0_29 = arith.constant 0 : index
      %c0_30 = arith.constant 0 : index
      %37 = vector.load %arg4[%c0_28, %c0_29, %c0_30] : memref<1x8x128xf32, #tpu.memory_space<vmem>>, vector<1x8x128xf32>
      tpu.vector_store %arg4[%c0_28, %c0_29, %c0_30], %36 {strides = array<i32>} : memref<1x8x128xf32, #tpu.memory_space<vmem>>, vector<1x8x128xf32>,
      %cst_31 = arith.constant 0.000000e+00 : f32
      %38 = vector.broadcast %cst_31 : f32 to vector<1x8x128xf32>
      %c0_32 = arith.constant 0 : index
      %c0_33 = arith.constant 0 : index
      %c0_34 = arith.constant 0 : index
      %39 = vector.load %arg5[%c0_32, %c0_33, %c0_34] : memref<1x8x128xf32, #tpu.memory_space<vmem>>, vector<1x8x128xf32>
      tpu.vector_store %arg5[%c0_32, %c0_33, %c0_34], %38 {strides = array<i32>} : memref<1x8x128xf32, #tpu.memory_space<vmem>>, vector<1x8x128xf32>,
      %cst_35 = arith.constant 0.000000e+00 : f32
      %40 = vector.broadcast %cst_35 : f32 to vector<1x8x128xf32>
      %c0_36 = arith.constant 0 : index
      %c0_37 = arith.constant 0 : index
      %c0_38 = arith.constant 0 : index
      %41 = vector.load %arg6[%c0_36, %c0_37, %c0_38] : memref<1x8x128xf32, #tpu.memory_space<vmem>>, vector<1x8x128xf32>
      tpu.vector_store %arg6[%c0_36, %c0_37, %c0_38], %40 {strides = array<i32>} : memref<1x8x128xf32, #tpu.memory_space<vmem>>, vector<1x8x128xf32>,
    } else {
    }
    %c0 = arith.constant 0 : index
    %c0_1 = arith.constant 0 : index
    %3 = vector.load %arg2[%c0, %c0_1] : memref<16x128xf32, #tpu.memory_space<vmem>>, vector<16x128xf32>
    %c0_2 = arith.constant 0 : index
    %c0_3 = arith.constant 0 : index
    %4 = vector.load %arg3[%c0_2, %c0_3] : memref<16x128xf32, #tpu.memory_space<vmem>>, vector<16x128xf32>
    %c0_4 = arith.constant 0 : index
    %c0_5 = arith.constant 0 : index
    %c0_6 = arith.constant 0 : index
    %5 = vector.load %arg4[%c0_4, %c0_5, %c0_6] : memref<1x8x128xf32, #tpu.memory_space<vmem>>, vector<1x8x128xf32>
    %6 = arith.mulf %3, %4 : vector<16x128xf32>
    %7 = vector.shape_cast %6 : vector<16x128xf32> to vector<2x8x128xf32>
    %cst = arith.constant dense<0.000000e+00> : vector<8x128xf32>
    %8 = vector.multi_reduction <add>, %7, %cst [0] : vector<2x8x128xf32> to vector<8x128xf32>
    %9 = vector.shape_cast %8 : vector<8x128xf32> to vector<1x8x128xf32>
    %10 = arith.addf %5, %9 : vector<1x8x128xf32>
    %c0_7 = arith.constant 0 : index
    %c0_8 = arith.constant 0 : index
    %c0_9 = arith.constant 0 : index
    %11 = vector.load %arg4[%c0_7, %c0_8, %c0_9] : memref<1x8x128xf32, #tpu.memory_space<vmem>>, vector<1x8x128xf32>
    tpu.vector_store %arg4[%c0_7, %c0_8, %c0_9], %10 {strides = array<i32>} : memref<1x8x128xf32, #tpu.memory_space<vmem>>, vector<1x8x128xf32>,
    %c0_10 = arith.constant 0 : index
    %c0_11 = arith.constant 0 : index
    %c0_12 = arith.constant 0 : index
    %12 = vector.load %arg5[%c0_10, %c0_11, %c0_12] : memref<1x8x128xf32, #tpu.memory_space<vmem>>, vector<1x8x128xf32>
    %13 = arith.addf %3, %4 : vector<16x128xf32>
    %14 = vector.shape_cast %13 : vector<16x128xf32> to vector<2x8x128xf32>
    %cst_13 = arith.constant dense<0.000000e+00> : vector<8x128xf32>
    %15 = vector.multi_reduction <add>, %14, %cst_13 [0] : vector<2x8x128xf32> to vector<8x128xf32>
    %16 = vector.shape_cast %15 : vector<8x128xf32> to vector<1x8x128xf32>
    %17 = arith.addf %12, %16 : vector<1x8x128xf32>
    %c0_14 = arith.constant 0 : index
    %c0_15 = arith.constant 0 : index
    %c0_16 = arith.constant 0 : index
    %18 = vector.load %arg5[%c0_14, %c0_15, %c0_16] : memref<1x8x128xf32, #tpu.memory_space<vmem>>, vector<1x8x128xf32>
    tpu.vector_store %arg5[%c0_14, %c0_15, %c0_16], %17 {strides = array<i32>} : memref<1x8x128xf32, #tpu.memory_space<vmem>>, vector<1x8x128xf32>,
    %19 = math.log %3 : vector<16x128xf32>
    %cst_17 = arith.constant -1.000000e+02 : f32
    %20 = vector.broadcast %cst_17 : f32 to vector<16x128xf32>
    %21 = arith.maximumf %19, %20 : vector<16x128xf32>
    %cst_18 = arith.constant 1.000000e+00 : f32
    %22 = vector.broadcast %cst_18 : f32 to vector<16x128xf32>
    %23 = arith.subf %22, %3 : vector<16x128xf32>
    %24 = math.log %23 : vector<16x128xf32>
    %cst_19 = arith.constant -1.000000e+02 : f32
    %25 = vector.broadcast %cst_19 : f32 to vector<16x128xf32>
    %26 = arith.maximumf %24, %25 : vector<16x128xf32>
    %c0_20 = arith.constant 0 : index
    %c0_21 = arith.constant 0 : index
    %c0_22 = arith.constant 0 : index
    %27 = vector.load %arg6[%c0_20, %c0_21, %c0_22] : memref<1x8x128xf32, #tpu.memory_space<vmem>>, vector<1x8x128xf32>
    %28 = arith.subf %21, %26 : vector<16x128xf32>
    %29 = arith.mulf %4, %28 : vector<16x128xf32>
    %30 = arith.addf %29, %26 : vector<16x128xf32>
    %31 = vector.shape_cast %30 : vector<16x128xf32> to vector<2x8x128xf32>
    %cst_23 = arith.constant dense<0.000000e+00> : vector<8x128xf32>
    %32 = vector.multi_reduction <add>, %31, %cst_23 [0] : vector<2x8x128xf32> to vector<8x128xf32>
    %33 = vector.shape_cast %32 : vector<8x128xf32> to vector<1x8x128xf32>
    %34 = arith.addf %27, %33 : vector<1x8x128xf32>
    %c0_24 = arith.constant 0 : index
    %c0_25 = arith.constant 0 : index
    %c0_26 = arith.constant 0 : index
    %35 = vector.load %arg6[%c0_24, %c0_25, %c0_26] : memref<1x8x128xf32, #tpu.memory_space<vmem>>, vector<1x8x128xf32>
    tpu.vector_store %arg6[%c0_24, %c0_25, %c0_26], %34 {strides = array<i32>} : memref<1x8x128xf32, #tpu.memory_space<vmem>>, vector<1x8x128xf32>,
    return
  }
  func.func @transform_0(%arg0: i32, %arg1: i32) -> (i32, i32) {
    %c1_i32 = arith.constant 1 : i32
    %0 = arith.muli %arg0, %c1_i32 : i32
    %1 = arith.addi %0, %arg1 : i32
    %c0_i32 = arith.constant 0 : i32
    %2 = arith.minsi %1, %c0_i32 : i32
    %c0_i32_0 = arith.constant 0 : i32
    %c0_i32_1 = arith.constant 0 : i32
    return %2, %c0_i32_0 : i32, i32
  }
  func.func @transform_1(%arg0: i32, %arg1: i32) -> (i32, i32) {
    %c1_i32 = arith.constant 1 : i32
    %0 = arith.muli %arg0, %c1_i32 : i32
    %1 = arith.addi %0, %arg1 : i32
    %c0_i32 = arith.constant 0 : i32
    %2 = arith.minsi %1, %c0_i32 : i32
    %c0_i32_0 = arith.constant 0 : i32
    %c0_i32_1 = arith.constant 0 : i32
    return %2, %c0_i32_0 : i32, i32
  }
  func.func @transform_2(%arg0: i32, %arg1: i32) -> (i32, i32, i32) {
    %c0_i32 = arith.constant 0 : i32
    %c0_i32_0 = arith.constant 0 : i32
    %c0_i32_1 = arith.constant 0 : i32
    return %arg0, %c0_i32, %c0_i32_0 : i32, i32, i32
  }
  func.func @transform_3(%arg0: i32, %arg1: i32) -> (i32, i32, i32) {
    %c0_i32 = arith.constant 0 : i32
    %c0_i32_0 = arith.constant 0 : i32
    %c0_i32_1 = arith.constant 0 : i32
    return %arg0, %c0_i32, %c0_i32_0 : i32, i32, i32
  }
  func.func @transform_4(%arg0: i32, %arg1: i32) -> (i32, i32, i32) {
    %c0_i32 = arith.constant 0 : i32
    %c0_i32_0 = arith.constant 0 : i32
    %c0_i32_1 = arith.constant 0 : i32
    return %arg0, %c0_i32, %c0_i32_0 : i32, i32, i32
  }
}

</mosaic_0001>

<bundles_post_ra>
// kernel: tpu_custom_call.1
= control target key start
LH: loop header
LB: loop body
LE: loop exit
PB: predicated region body
PF: predicated region fallthrough
CT: control target
= control target key end

     0   :  { %10 = vsyncpa [#allocation3], 0  ;;  %s384_s0 = inlined_call_operand.hbm [shape: f32[16,128], index: 0, kind: input, shape index: {}]   ;;  %s385_s1 = inlined_call_operand.hbm [shape: f32[16,128], index: 1, kind: input, shape index: {}]   ;;  %s386_s2 = inlined_call_operand.hbm [shape: f32[1,8,128], index: 2, kind: output, shape index: {0}]   ;;  %s387_s3 = inlined_call_operand.hbm [shape: f32[1,8,128], index: 3, kind: output, shape index: {1}]   ;;  %s388_s4 = inlined_call_operand.hbm [shape: f32[1,8,128], index: 4, kind: output, shape index: {2}]  }
   0x1   :  { %11 = vsyncpa [#allocation6], 0 }
   0x2   :  { %12 = vsyncpa [#allocation4], 0 }
   0x3   :  { %13 = vsyncpa [#allocation9], 0  ;;  %s292_s15 = smov [#allocation2]   ;;  %s174_s19 = scalar_lea.hbm %s384_s0, 256 }
   0x4   :  { %s25_s16 = sshll.u32 %s292_s15, 4  ;;  %p175_p0 = scmp.ne.s32.totalorder %s384_s0, %s174_s19  ;;  %s26_s16 = int_to_ptr.vmem [resolvable:$true] %s25_s16 }
   0x5   :  { %p178_p1 = scmp.lt.u32.totalorder %s174_s19, %s384_s0 }
   0x7   :  { %p180_p2 = pnand %p178_p1, %p175_p0 }
   0x9   :  { %183 = shalt.err (!%p180_p2)
}
   0xa   :  { %s184_s24 = scalar_lea.vmem %s26_s16, 256  ;;  %p189_p4 = scmp.lt.s32.totalorder %s26_s16, %s26_s16 }
   0xb   :  { %p185_p3 = scmp.ne.s32.totalorder %s26_s16, %s184_s24  ;;  %p190_p5 = scmp.lt.s32.totalorder %s184_s24, %s184_s24 }
   0xd   :  { %p191_p6 = por %p190_p5, %p189_p4 }
   0xf   :  { %p192_p7 = pnand %p191_p6, %p185_p3 }
  0x11   :  { %195 = shalt.err (!%p192_p7)
}
  0x12   :  { %s293_s25 = smov 128   ;;  %s294_s26 = smov 8  }
  0x13   :  { %31 = dma.hbm_to_vmem [thread:$0]  %s384_s0, 256, %s26_s16, [#allocation3], %s293_s25, %s293_s25, %s294_s26  }
  0x14   :  { %s295_s29 = smov [#allocation5]   ;;  %s196_s7 = scalar_lea.hbm %s385_s1, 256 }
  0x15   :  { %s43_s30 = sshll.u32 %s295_s29, 4  ;;  %p197_p8 = scmp.ne.s32.totalorder %s385_s1, %s196_s7  ;;  %s44_s30 = int_to_ptr.vmem [resolvable:$true] %s43_s30 }
  0x16   :  { %p200_p9 = scmp.lt.u32.totalorder %s196_s7, %s385_s1 }
  0x18   :  { %p202_p10 = pnand %p200_p9, %p197_p8 }
  0x1a   :  { %205 = shalt.err (!%p202_p10)
}
  0x1b   :  { %s206_s12 = scalar_lea.vmem %s44_s30, 256  ;;  %p211_p12 = scmp.lt.s32.totalorder %s44_s30, %s44_s30 }
  0x1c   :  { %p207_p11 = scmp.ne.s32.totalorder %s44_s30, %s206_s12  ;;  %p212_p13 = scmp.lt.s32.totalorder %s206_s12, %s206_s12 }
  0x1e   :  { %p213_p0 = por %p212_p13, %p211_p12 }
  0x20   :  { %p214_p1 = pnand %p213_p0, %p207_p11 }
  0x22   :  { %217 = shalt.err (!%p214_p1)
}
  0x23   :  { %49 = dma.hbm_to_vmem [thread:$0]  %s385_s1, 256, %s44_s30, [#allocation6], %s293_s25, %s293_s25, %s294_s26  }
  0x24   :  { %284 = dma.done.wait [#allocation3], 256  }
  0x25   :  { %285 = vsyncadd [#allocation3], 4294967040 }
  0x26   :  { %286 = dma.done.wait [#allocation6], 256  }
  0x27   :  { %287 = vsyncadd [#allocation6], 4294967040  ;;  %v71_v0 = vld [vmem:[#allocation2] sm:$0xff]  ;;  %v72_v1 = vld [vmem:[#allocation2 + $0x8] sm:$0xff]  ;;  %s296_s14 = smov [#allocation8]   ;;  %s297_s1 = smov [#allocation7]  }
  0x28   :  { %v73_v2 = vld [vmem:[#allocation5] sm:$0xff]  ;;  %v74_v3 = vld [vmem:[#allocation5 + $0x8] sm:$0xff]  ;;  %166 = vlog2.f32 %v71_v0  ;;  %v93_v6 = vsub.f32 1.0, %v71_v0  ;;  %v94_v9 = vsub.f32 1.0, %v72_v1  ;;  %s127_s15 = sshll.u32 %s296_s14, 4  ;;  %s117_s16 = sshll.u32 %s297_s1, 4  ;;  %s128_s15 = int_to_ptr.vmem [resolvable:$true] %s127_s15  ;;  %s118_s16 = int_to_ptr.vmem [resolvable:$true] %s117_s16 }
  0x29   :  { %v82_v4 = vadd.f32 %v73_v2, %v71_v0  ;;  %v76_v5 = vmul.f32 %v73_v2, %v71_v0  ;;  %v83_v7 = vadd.f32 %v74_v3, %v72_v1  ;;  %168 = vlog2.f32 %v72_v1  ;;  %s218_s17 = scalar_lea.vmem %s128_s15, 128  ;;  %p223_p3 = scmp.lt.s32.totalorder %s128_s15, %s128_s15 }
  0x2a   :  { %v77_v8 = vmul.f32 %v74_v3, %v72_v1  ;;  %170 = vlog2.f32 %v93_v6  ;;  %p219_p2 = scmp.ne.s32.totalorder %s128_s15, %s218_s17  ;;  %p224_p4 = scmp.lt.s32.totalorder %s218_s17, %s218_s17 }
  0x2b   :  { %v84_v10 = vadd.f32 %v83_v7, %v82_v4  ;;  %172 = vlog2.f32 %v94_v9 }
  0x2c   :  { %v78_v11 = vadd.f32 %v77_v8, %v76_v5  ;;  %p225_p5 = por %p224_p4, %p223_p3 }
  0x2d   :  { %86 = vst [vmem:[#allocation8] sm:$0xff] %v84_v10 }
  0x2e   :  { %80 = vst [vmem:[#allocation7] sm:$0xff] %v78_v11  ;;  %p226_p6 = pnand %p225_p5, %p219_p2 }
  0x30   :  { %229 = shalt.err (!%p226_p6)
}
  0x31   :  { %s230_s20 = scalar_lea.hbm %s387_s3, 128 }
  0x32   :  { %p231_p7 = scmp.ne.s32.totalorder %s387_s3, %s230_s20  ;;  %p234_p8 = scmp.lt.u32.totalorder %s230_s20, %s387_s3 }
  0x34   :  { %p236_p9 = pnand %p234_p8, %p231_p7 }
  0x36   :  { %239 = shalt.err (!%p236_p9)
}
  0x37   :  { %130 = dma.vmem_to_hbm [thread:$0]  %s128_s15, 128, %s387_s3, [#allocation9]  }
  0x38   :  { %s240_s27 = scalar_lea.vmem %s118_s16, 128  ;;  %p245_p11 = scmp.lt.s32.totalorder %s118_s16, %s118_s16 }
  0x39   :  { %p241_p10 = scmp.ne.s32.totalorder %s118_s16, %s240_s27  ;;  %p246_p12 = scmp.lt.s32.totalorder %s240_s27, %s240_s27 }
  0x3b   :  { %p247_p13 = por %p246_p12, %p245_p11 }
  0x3d   :  { %p248_p0 = pnand %p247_p13, %p241_p10 }
  0x3f   :  { %251 = shalt.err (!%p248_p0)
}
  0x40   :  { %s252_s30 = scalar_lea.hbm %s386_s2, 128 }
  0x41   :  { %p253_p1 = scmp.ne.s32.totalorder %s386_s2, %s252_s30  ;;  %p256_p2 = scmp.lt.u32.totalorder %s252_s30, %s386_s2 }
  0x43   :  { %p258_p3 = pnand %p256_p2, %p253_p1 }
  0x45   :  { %261 = shalt.err (!%p258_p3)
}
  0x46   :  { %120 = dma.vmem_to_hbm [thread:$0]  %s118_s16, 128, %s386_s2, [#allocation4]   ;;  %v167_v12 = vpop.eup %166 }
  0x47   :  { %v169_v13 = vpop.eup %168  ;;  %v88_v14 = vmul.f32 0.6931472, %v167_v12  ;;  %s298_s10 = smov [#allocation10]  }
  0x48   :  { %v171_v15 = vpop.eup %170  ;;  %v90_v16 = vmul.f32 0.6931472, %v169_v13  ;;  %s137_s2 = sshll.u32 %s298_s10, 4  ;;  %s138_s2 = int_to_ptr.vmem [resolvable:$true] %s137_s2 }
  0x49   :  { %v173_v17 = vpop.eup %172  ;;  %v91_v18 = vmax.f32 %v88_v14, -100.0  ;;  %v96_v19 = vmul.f32 0.6931472, %v171_v15  ;;  %s262_s11 = scalar_lea.vmem %s138_s2, 128  ;;  %p267_p5 = scmp.lt.s32.totalorder %s138_s2, %s138_s2 }
  0x4a   :  { %v92_v20 = vmax.f32 %v90_v16, -100.0  ;;  %v98_v21 = vmul.f32 0.6931472, %v173_v17  ;;  %p263_p4 = scmp.ne.s32.totalorder %s138_s2, %s262_s11  ;;  %p268_p6 = scmp.lt.s32.totalorder %s262_s11, %s262_s11 }
  0x4b   :  { %v99_v22 = vmax.f32 %v96_v19, -100.0 }
  0x4c   :  { %v100_v23 = vmax.f32 %v98_v21, -100.0  ;;  %p269_p7 = por %p268_p6, %p267_p5 }
  0x4d   :  { %v102_v24 = vsub.f32 %v91_v18, %v99_v22 }
  0x4e   :  { %v103_v25 = vsub.f32 %v92_v20, %v100_v23  ;;  %p270_p8 = pnand %p269_p7, %p263_p4 }
  0x4f   :  { %v104_v26 = vmul.f32 %v102_v24, %v73_v2 }
  0x50   :  { %v105_v27 = vmul.f32 %v103_v25, %v74_v3 }
  0x51   :  { %v106_v28 = vadd.f32 %v104_v26, %v99_v22 }
  0x52   :  { %v107_v29 = vadd.f32 %v105_v27, %v100_v23 }
  0x54   :  { %v108_v30 = vadd.f32 %v107_v29, %v106_v28 }
  0x56   :  { %110 = vst [vmem:[#allocation10] sm:$0xff] %v108_v30 }
  0x57   :  { %273 = shalt.err (!%p270_p8)
}
  0x58   :  { %s274_s13 = scalar_lea.hbm %s388_s4, 128 }
  0x59   :  { %p275_p9 = scmp.ne.s32.totalorder %s388_s4, %s274_s13  ;;  %p278_p10 = scmp.lt.u32.totalorder %s274_s13, %s388_s4 }
  0x5b   :  { %p280_p11 = pnand %p278_p10, %p275_p9 }
  0x5d   :  { %283 = shalt.err (!%p280_p11)
}
  0x5e   :  { %140 = dma.vmem_to_hbm [thread:$0]  %s138_s2, 128, %s388_s4, [#allocation9]  }
  0x5f   :  { %288 = dma.done.wait [#allocation4], 128  }
  0x60   :  { %289 = vsyncadd [#allocation4], 4294967168 }
  0x61   :  { %290 = dma.done.wait [#allocation9], 256  }
  0x62   :  { %291 = vsyncadd [#allocation9], 4294967040 }
  0x63   :  { %150 = vsyncpa [#allocation3], 1 }
  0x64   :  { %151 = vsyncpa [#allocation6], 1 }
  0x65   :  { %152 = vsyncpa [#allocation4], 1 }
  0x66   :  { %153 = vsyncpa [#allocation9], 1 }

</bundles_post_ra>
